<compile_context>
chip_gen: v5e
topology: v5e:2x2
jax: 0.10.0
libtpu: 0.0.40
codegen_flags: <defaults>
</compile_context>

<pallas_src>
import jax
import jax.numpy as jnp
from jax.experimental import pallas as pl
from jax.experimental.pallas import tpu as pltpu

LANE = 128


def _round_up(n, m):
    return ((n + m - 1) // m) * m


def mlp_kernel(x_ref, w1_ref, b1_ref, w2_ref, b2_ref, w3_ref, b3_ref, o_ref):
    # ---- fc1 + relu (dropout = identity at eval) ----
    h1 = jnp.dot(x_ref[...], w1_ref[...], preferred_element_type=jnp.float32)
    h1 = jnp.maximum(h1 + b1_ref[...], 0.0)

    # ---- fc2 + relu (dropout = identity at eval); hidden2 padded to 128 ----
    h2 = jnp.dot(h1.astype(jnp.bfloat16), w2_ref[...],
                 preferred_element_type=jnp.float32)
    h2 = jnp.maximum(h2 + b2_ref[...], 0.0)

    # ---- fc3 (output padded to 128 lanes; padded bias lanes are -1e30) ----
    logits = jnp.dot(h2.astype(jnp.bfloat16), w3_ref[...],
                     preferred_element_type=jnp.float32)
    logits = logits + b3_ref[...]

    # ---- log_softmax over the last axis (padded lanes contribute exp ~ 0) ----
    m = jnp.max(logits, axis=-1, keepdims=True)
    shifted = logits - m
    lse = jnp.log(jnp.sum(jnp.exp(shifted), axis=-1, keepdims=True))
    o_ref[...] = (shifted - lse).astype(o_ref.dtype)


def mlp_forward(x, params, tile_m=256):
    """x: [batch, input_dim] f32.  params: (w1,b1,w2,b2,w3,b3) with w as [in,out]."""
    w1, b1, w2, b2, w3, b3 = params
    batch, in_dim = x.shape
    hid1 = w1.shape[1]            # 128 (already lane-dense)
    hid2 = w2.shape[1]            # 64
    out_dim = w3.shape[1]         # e.g. 10

    hid2_p = _round_up(hid2, LANE)     # 64  -> 128
    out_p = _round_up(out_dim, LANE)   # 10  -> 128

    # ---- lane-dense weight/bias prep (numerically exact for real columns) ----
    w2p = jnp.pad(w2, ((0, 0), (0, hid2_p - hid2)))
    b2p = jnp.pad(b2, ((0, 0), (0, hid2_p - hid2)))
    w3p = jnp.pad(w3, ((0, hid2_p - hid2), (0, out_p - out_dim)))
    # padded output lanes get a large negative bias so exp() ~ 0 in log_softmax
    b3p = jnp.pad(b3, ((0, 0), (0, out_p - out_dim)), constant_values=-1e30)

    # ---- bf16 for the MXU input streams; accumulate in f32 ----
    xb = x.astype(jnp.bfloat16)
    w1b = w1.astype(jnp.bfloat16)
    w2b = w2p.astype(jnp.bfloat16)
    w3b = w3p.astype(jnp.bfloat16)

    # ---- batch tiling (pad to a sublane-safe multiple of the M tile) ----
    tile_m = min(tile_m, _round_up(batch, 16))
    batch_p = _round_up(batch, tile_m)
    if batch_p != batch:
        xb = jnp.pad(xb, ((0, batch_p - batch), (0, 0)))
    grid = (batch_p // tile_m,)

    const = lambda a: pl.BlockSpec(a.shape, lambda i: (0,) * a.ndim)

    out = pl.pallas_call(
        mlp_kernel,
        out_shape=jax.ShapeDtypeStruct((batch_p, out_p), jnp.float32),
        grid=grid,
        in_specs=[
            pl.BlockSpec((tile_m, in_dim), lambda i: (i, 0)),   # x: tiled over batch
            const(w1b), const(b1),                              # weights stay resident
            const(w2b), const(b2p),
            const(w3b), const(b3p),
        ],
        out_specs=pl.BlockSpec((tile_m, out_p), lambda i: (i, 0)),
        compiler_params=pltpu.CompilerParams(
            dimension_semantics=("parallel",)),
    )(xb, w1b, b1, w2b, b2p, w3b, b3p)

    return out[:batch, :out_dim]


def mlp_reference(x, params):
    """Pure-JAX f32 reference of the PyTorch forward (eval mode)."""
    w1, b1, w2, b2, w3, b3 = params
    h1 = jnp.maximum(x @ w1 + b1, 0.0)
    h2 = jnp.maximum(h1 @ w2 + b2, 0.0)
    logits = h2 @ w3 + b3
    return jax.nn.log_softmax(logits, axis=1)


def init_params(key, input_dim, output_dim):
    """Deterministic init mimicking nn.Linear's uniform(-1/sqrt(fan_in), +)."""
    dims = [(input_dim, 128), (128, 64), (64, output_dim)]
    params = []
    for fan_in, fan_out in dims:
        kw, kb, key = jax.random.split(key, 3)
        bound = 1.0 / jnp.sqrt(fan_in)
        w = jax.random.uniform(kw, (fan_in, fan_out), jnp.float32, -bound, bound)
        b = jax.random.uniform(kb, (1, fan_out), jnp.float32, -bound, bound)
        params += [w, b]
    return params


if __name__ == "__main__":
    key = jax.random.PRNGKey(0)
    kx, kp = jax.random.split(key)

    batch, input_dim, output_dim = 8, 32, 10
    x = jax.random.normal(kx, (batch, input_dim), jnp.float32)
    params = init_params(kp, input_dim, output_dim)

    out = mlp_forward(x, params)
    jax.block_until_ready(out)

    assert out.shape == (batch, output_dim)

    # sanity 1: log_softmax rows should exp-sum to 1
    row_sums = jnp.sum(jnp.exp(out), axis=1)
    assert bool(jnp.all(jnp.abs(row_sums - 1.0) < 1e-3))

    # sanity 2: matches the f32 reference within bf16-matmul tolerance
    ref = mlp_reference(x, params)
    assert bool(jnp.all(jnp.abs(out - ref) < 2e-1))

    print("KERNEL_OK")
</pallas_src>

<mosaic_0001>
module attributes {stable_mosaic.version = 11 : i64} {
  func.func @mlp_kernel(%arg0: i32, %arg1: memref<16x32xbf16, #tpu.memory_space<vmem>>, %arg2: memref<32x128xbf16, #tpu.memory_space<vmem>>, %arg3: memref<1x128xf32, #tpu.memory_space<vmem>>, %arg4: memref<128x128xbf16, #tpu.memory_space<vmem>>, %arg5: memref<1x128xf32, #tpu.memory_space<vmem>>, %arg6: memref<128x128xbf16, #tpu.memory_space<vmem>>, %arg7: memref<1x128xf32, #tpu.memory_space<vmem>>, %arg8: memref<16x128xf32, #tpu.memory_space<vmem>>) attributes {dimension_semantics = [#tpu.dimension_semantics<parallel>], iteration_bounds = array<i64: 1>, scalar_prefetch = 0 : i64, scratch_operands = 0 : i64, tpu.core_type = #tpu.core_type<tc>, window_params = [{transform_indices = @transform_0, window_bounds = array<i64: 16, 32>}, {pipeline_mode = #tpu.pipeline_mode<synchronous>, transform_indices = @transform_1, window_bounds = array<i64: 32, 128>}, {pipeline_mode = #tpu.pipeline_mode<synchronous>, transform_indices = @transform_2, window_bounds = array<i64: 1, 128>}, {pipeline_mode = #tpu.pipeline_mode<synchronous>, transform_indices = @transform_3, window_bounds = array<i64: 128, 128>}, {pipeline_mode = #tpu.pipeline_mode<synchronous>, transform_indices = @transform_4, window_bounds = array<i64: 1, 128>}, {pipeline_mode = #tpu.pipeline_mode<synchronous>, transform_indices = @transform_5, window_bounds = array<i64: 128, 128>}, {pipeline_mode = #tpu.pipeline_mode<synchronous>, transform_indices = @transform_6, window_bounds = array<i64: 1, 128>}, {transform_indices = @transform_7, window_bounds = array<i64: 16, 128>}]} {
    %c0 = arith.constant 0 : index
    %c0_0 = arith.constant 0 : index
    %0 = vector.load %arg1[%c0, %c0_0] : memref<16x32xbf16, #tpu.memory_space<vmem>>, vector<16x32xbf16>
    %c0_1 = arith.constant 0 : index
    %c0_2 = arith.constant 0 : index
    %1 = vector.load %arg2[%c0_1, %c0_2] : memref<32x128xbf16, #tpu.memory_space<vmem>>, vector<32x128xbf16>
    %cst = arith.constant dense<0.000000e+00> : vector<16x128xf32>
    %2 = tpu.matmul %0, %1, %cst {dimension_numbers = #tpu.dot_dimension_numbers<[1], [0], [0], [1], [0, 0, 1, 1], [], []>} : vector<16x32xbf16>, vector<32x128xbf16>, vector<16x128xf32> -> vector<16x128xf32>
    %c0_3 = arith.constant 0 : index
    %c0_4 = arith.constant 0 : index
    %3 = vector.load %arg3[%c0_3, %c0_4] : memref<1x128xf32, #tpu.memory_space<vmem>>, vector<1x128xf32>
    %4 = vector.broadcast %3 : vector<1x128xf32> to vector<16x128xf32>
    %5 = arith.addf %2, %4 : vector<16x128xf32>
    %cst_5 = arith.constant 0.000000e+00 : f32
    %6 = vector.broadcast %cst_5 : f32 to vector<16x128xf32>
    %7 = arith.maximumf %5, %6 : vector<16x128xf32>
    %8 = arith.truncf %7 : vector<16x128xf32> to vector<16x128xbf16>
    %c0_6 = arith.constant 0 : index
    %c0_7 = arith.constant 0 : index
    %9 = vector.load %arg4[%c0_6, %c0_7] : memref<128x128xbf16, #tpu.memory_space<vmem>>, vector<128x128xbf16>
    %cst_8 = arith.constant dense<0.000000e+00> : vector<16x128xf32>
    %10 = tpu.matmul %8, %9, %cst_8 {dimension_numbers = #tpu.dot_dimension_numbers<[1], [0], [0], [1], [0, 0, 1, 1], [], []>} : vector<16x128xbf16>, vector<128x128xbf16>, vector<16x128xf32> -> vector<16x128xf32>
    %c0_9 = arith.constant 0 : index
    %c0_10 = arith.constant 0 : index
    %11 = vector.load %arg5[%c0_9, %c0_10] : memref<1x128xf32, #tpu.memory_space<vmem>>, vector<1x128xf32>
    %12 = vector.broadcast %11 : vector<1x128xf32> to vector<16x128xf32>
    %13 = arith.addf %10, %12 : vector<16x128xf32>
    %cst_11 = arith.constant 0.000000e+00 : f32
    %14 = vector.broadcast %cst_11 : f32 to vector<16x128xf32>
    %15 = arith.maximumf %13, %14 : vector<16x128xf32>
    %16 = arith.truncf %15 : vector<16x128xf32> to vector<16x128xbf16>
    %c0_12 = arith.constant 0 : index
    %c0_13 = arith.constant 0 : index
    %17 = vector.load %arg6[%c0_12, %c0_13] : memref<128x128xbf16, #tpu.memory_space<vmem>>, vector<128x128xbf16>
    %cst_14 = arith.constant dense<0.000000e+00> : vector<16x128xf32>
    %18 = tpu.matmul %16, %17, %cst_14 {dimension_numbers = #tpu.dot_dimension_numbers<[1], [0], [0], [1], [0, 0, 1, 1], [], []>} : vector<16x128xbf16>, vector<128x128xbf16>, vector<16x128xf32> -> vector<16x128xf32>
    %c0_15 = arith.constant 0 : index
    %c0_16 = arith.constant 0 : index
    %19 = vector.load %arg7[%c0_15, %c0_16] : memref<1x128xf32, #tpu.memory_space<vmem>>, vector<1x128xf32>
    %20 = vector.broadcast %19 : vector<1x128xf32> to vector<16x128xf32>
    %21 = arith.addf %18, %20 : vector<16x128xf32>
    %cst_17 = arith.constant dense<0xFF800000> : vector<16xf32>
    %22 = vector.multi_reduction <maximumf>, %21, %cst_17 [1] : vector<16x128xf32> to vector<16xf32>
    %23 = vector.shape_cast %22 : vector<16xf32> to vector<16x1xf32>
    %24 = vector.broadcast %23 : vector<16x1xf32> to vector<16x128xf32>
    %25 = arith.subf %21, %24 : vector<16x128xf32>
    %26 = math.exp %25 : vector<16x128xf32>
    %cst_18 = arith.constant dense<0.000000e+00> : vector<16xf32>
    %27 = vector.multi_reduction <add>, %26, %cst_18 [1] : vector<16x128xf32> to vector<16xf32>
    %28 = vector.shape_cast %27 : vector<16xf32> to vector<16x1xf32>
    %29 = math.log %28 : vector<16x1xf32>
    %30 = vector.broadcast %29 : vector<16x1xf32> to vector<16x128xf32>
    %31 = arith.subf %25, %30 : vector<16x128xf32>
    %c0_19 = arith.constant 0 : index
    %c0_20 = arith.constant 0 : index
    %32 = vector.load %arg8[%c0_19, %c0_20] : memref<16x128xf32, #tpu.memory_space<vmem>>, vector<16x128xf32>
    tpu.vector_store %arg8[%c0_19, %c0_20], %31 {strides = array<i32>} : memref<16x128xf32, #tpu.memory_space<vmem>>, vector<16x128xf32>,
    return
  }
  func.func @transform_0(%arg0: i32) -> (i32, i32) {
    %c0_i32 = arith.constant 0 : i32
    %c0_i32_0 = arith.constant 0 : i32
    return %arg0, %c0_i32 : i32, i32
  }
  func.func @transform_1(%arg0: i32) -> (i32, i32) {
    %c0_i32 = arith.constant 0 : i32
    %c0_i32_0 = arith.constant 0 : i32
    %c0_i32_1 = arith.constant 0 : i32
    return %c0_i32, %c0_i32_0 : i32, i32
  }
  func.func @transform_2(%arg0: i32) -> (i32, i32) {
    %c0_i32 = arith.constant 0 : i32
    %c0_i32_0 = arith.constant 0 : i32
    %c0_i32_1 = arith.constant 0 : i32
    return %c0_i32, %c0_i32_0 : i32, i32
  }
  func.func @transform_3(%arg0: i32) -> (i32, i32) {
    %c0_i32 = arith.constant 0 : i32
    %c0_i32_0 = arith.constant 0 : i32
    %c0_i32_1 = arith.constant 0 : i32
    return %c0_i32, %c0_i32_0 : i32, i32
  }
  func.func @transform_4(%arg0: i32) -> (i32, i32) {
    %c0_i32 = arith.constant 0 : i32
    %c0_i32_0 = arith.constant 0 : i32
    %c0_i32_1 = arith.constant 0 : i32
    return %c0_i32, %c0_i32_0 : i32, i32
  }
  func.func @transform_5(%arg0: i32) -> (i32, i32) {
    %c0_i32 = arith.constant 0 : i32
    %c0_i32_0 = arith.constant 0 : i32
    %c0_i32_1 = arith.constant 0 : i32
    return %c0_i32, %c0_i32_0 : i32, i32
  }
  func.func @transform_6(%arg0: i32) -> (i32, i32) {
    %c0_i32 = arith.constant 0 : i32
    %c0_i32_0 = arith.constant 0 : i32
    %c0_i32_1 = arith.constant 0 : i32
    return %c0_i32, %c0_i32_0 : i32, i32
  }
  func.func @transform_7(%arg0: i32) -> (i32, i32) {
    %c0_i32 = arith.constant 0 : i32
    %c0_i32_0 = arith.constant 0 : i32
    return %arg0, %c0_i32 : i32, i32
  }
}

</mosaic_0001>

<bundles_post_ra>
// kernel: tpu_custom_call.1
= control target key start
LH: loop header
LB: loop body
LE: loop exit
PB: predicated region body
PF: predicated region fallthrough
CT: control target
= control target key end

     0   :  { %12 = vsyncpa [#allocation3], 0  ;;  %s666_s0 = inlined_call_operand.hbm [shape: bf16[16,32], index: 0, kind: input, shape index: {}]   ;;  %s667_s1 = inlined_call_operand.hbm [shape: bf16[32,128], index: 1, kind: input, shape index: {}]   ;;  %s668_s2 = inlined_call_operand.vmem [shape: f32[1,128], index: 2, kind: input, shape index: {}]   ;;  %s669_s3 = inlined_call_operand.hbm [shape: bf16[128,128], index: 3, kind: input, shape index: {}]   ;;  %s670_s4 = inlined_call_operand.vmem [shape: f32[1,128], index: 4, kind: input, shape index: {}]   ;;  %s671_s5 = inlined_call_operand.hbm [shape: bf16[128,128], index: 5, kind: input, shape index: {}]   ;;  %s672_s6 = inlined_call_operand.vmem [shape: f32[1,128], index: 6, kind: input, shape index: {}]   ;;  %s673_s7 = inlined_call_operand.hbm [shape: f32[16,128], index: 7, kind: output, shape index: {}]  }
   0x1   :  { %13 = vsyncpa [#allocation6], 0 }
   0x2   :  { %14 = vsyncpa [#allocation9], 0 }
   0x3   :  { %15 = vsyncpa [#allocation4], 0  ;;  %s33_s26 = sshll.u32 %s667_s1, 4  ;;  %s593_s27 = smov [#allocation5]   ;;  %s34_s26 = int_to_ptr.hbm [resolvable:$true] %s33_s26 }
   0x4   :  { %s35_s28 = sshll.u32 %s593_s27, 4  ;;  %s20_s8 = sshll.u32 %s666_s0, 4  ;;  %s36_s28 = int_to_ptr.vmem [resolvable:$true] %s35_s28  ;;  %s21_s8 = int_to_ptr.hbm [resolvable:$true] %s20_s8 }
   0x5   :  { %s594_s9 = smov 64   ;;  %s595_s10 = smov 4  }
   0x6   :  { %41 = dma.hbm_to_vmem [thread:$0]  %s34_s26, 256, %s36_s28, [#allocation6], %s594_s9, %s594_s9, %s595_s10  }
   0x7   :  { %s596_s11 = smov [#allocation2]   ;;  %s48_s15 = sshll.u32 %s669_s3, 4  ;;  %s49_s15 = int_to_ptr.hbm [resolvable:$true] %s48_s15 }
   0x8   :  { %s22_s12 = sshll.u32 %s596_s11, 4  ;;  %s63_s17 = sshll.u32 %s671_s5, 4  ;;  %s23_s12 = int_to_ptr.vmem [resolvable:$true] %s22_s12  ;;  %s64_s17 = int_to_ptr.hbm [resolvable:$true] %s63_s17 }
   0x9   :  { %28 = dma.hbm_to_vmem [thread:$0]  %s21_s8, 128, %s23_s12, [#allocation3], %s594_s9, %s594_s9, %s595_s10  }
   0xa   :  { %s597_s18 = smov [#allocation7]   ;;  %s598_s0 = smov [#allocation8]  }
   0xb   :  { %s50_s19 = sshll.u32 %s597_s18, 4  ;;  %s65_s20 = sshll.u32 %s598_s0, 4  ;;  %s51_s19 = int_to_ptr.vmem [resolvable:$true] %s50_s19  ;;  %s66_s20 = int_to_ptr.vmem [resolvable:$true] %s65_s20 }
   0xc   :  { %56 = dma.hbm_to_vmem [thread:$0]  %s49_s15, 1024, %s51_s19, [#allocation6], %s594_s9, %s594_s9, %s595_s10  }
   0xd   :  { %71 = dma.hbm_to_vmem [thread:$0]  %s64_s17, 1024, %s66_s20, [#allocation9], %s594_s9, %s594_s9, %s595_s10  }
   0xe   :  { %585 = dma.done.wait [#allocation3], 128  }
   0xf   :  { %586 = vsyncadd [#allocation3], 4294967168 }
  0x10   :  { %587 = dma.done.wait [#allocation6], 1280  }
  0x11   :  { %588 = vsyncadd [#allocation6], 4294966016 }
  0x12   :  { %589 = dma.done.wait [#allocation9], 1024  }
  0x13   :  { %590 = vsyncadd [#allocation9], 4294966272  ;;  %v428_v0 = vld [vmem:[#allocation5 + $0x8] sm:$0xff]  ;;  %v427_v2 = vld [vmem:[#allocation5] sm:$0xff]  ;;  %vm118_vm0 = vcmask 261120   ;;  %s334_s26 = sshll.u32 %s673_s7, 4  ;;  %s335_s26 = int_to_ptr.hbm [resolvable:$true] %s334_s26 }
  0x14   :  { %v436_v1 = vld [vmem:[#allocation7 + $0x38] sm:$0xff]  ;;  %128 = vmatpush.bf16.msra.mxu0 %v428_v0  ;;  %v435_v3 = vld [vmem:[#allocation7 + $0x30] sm:$0xff]  ;;  %v426_v4 = vld [vmem:[#allocation2] sm:$0xff]  ;;  %s600_s27 = smov 128   ;;  %s601_s28 = smov 8  }
  0x15   :  { %207 = vmatpush.bf16.msra.mxu1 %v436_v1  ;;  %v434_v5 = vld [vmem:[#allocation7 + $0x28] sm:$0xff]  ;;  %v433_v6 = vld [vmem:[#allocation7 + $0x20] sm:$0xff]  ;;  %v432_v7 = vld [vmem:[#allocation7 + $0x18] sm:$0xff] }
  0x16   :  { %v431_v8 = vld [vmem:[#allocation7 + $0x10] sm:$0xff]  ;;  %v430_v9 = vld [vmem:[#allocation7 + $0x8] sm:$0xff]  ;;  %v429_v10 = vld [vmem:[#allocation7] sm:$0xff] }
  0x17   :  { %v444_v11 = vld [vmem:[#allocation8 + $0x38] sm:$0xff]  ;;  %v443_v12 = vld [vmem:[#allocation8 + $0x30] sm:$0xff]  ;;  %v442_v13 = vld [vmem:[#allocation8 + $0x28] sm:$0xff] }
  0x18   :  { %129 = vmatpush.bf16.msra.mxu0 %v427_v2  ;;  %292 = vmatpush.bf16.msra.mxu2 %v444_v11  ;;  %v441_v14 = vld [vmem:[#allocation8 + $0x20] sm:$0xff]  ;;  %v454_v16 = vld [vmem:[%s668_s2] ss:$0 sm:$0xff]  ;;  %v440_v23 = vld [vmem:[#allocation8 + $0x18] sm:$0xff] }
  0x19   :  { %208 = vmatpush.bf16.msra.mxu1 %v435_v3  ;;  %v439_v24 = vld [vmem:[#allocation8 + $0x10] sm:$0xff]  ;;  %v438_v25 = vld [vmem:[#allocation8 + $0x8] sm:$0xff]  ;;  %v437_v26 = vld [vmem:[#allocation8] sm:$0xff] }
  0x1a   :  { %v455_v28 = vld [vmem:[%s670_s4] ss:$0 sm:$0xff]  ;;  %s599_s4 = smov [#allocation10]  }
  0x1b   :  { %361 = vmatmul.msk.bf16.vlgmr.msra.gmra.mxu0 %vm118_vm0, %v426_v4  ;;  %v456_v35 = vld [vmem:[%s672_s6] ss:$0 sm:$0xff]  ;;  %s332_s6 = sshll.u32 %s599_s4, 4  ;;  %s333_s6 = int_to_ptr.vmem [resolvable:$true] %s332_s6 }
  0x1c   :  { %293 = vmatpush.bf16.msra.mxu2 %v443_v12 }
  0x1d   :  { %209 = vmatpush.bf16.msra.mxu1 %v434_v5 }
  0x20   :  { %294 = vmatpush.bf16.msra.mxu2 %v442_v13 }
  0x21   :  { %210 = vmatpush.bf16.msra.mxu1 %v433_v6 }
  0x24   :  { %295 = vmatpush.bf16.msra.mxu2 %v441_v14 }
  0x25   :  { %211 = vmatpush.bf16.msra.mxu1 %v432_v7 }
  0x28   :  { %296 = vmatpush.bf16.msra.mxu2 %v440_v23 }
  0x29   :  { %212 = vmatpush.bf16.msra.mxu1 %v431_v8 }
  0x2c   :  { %297 = vmatpush.bf16.msra.mxu2 %v439_v24 }
  0x2d   :  { %213 = vmatpush.bf16.msra.mxu1 %v430_v9 }
  0x30   :  { %298 = vmatpush.bf16.msra.mxu2 %v438_v25 }
  0x31   :  { %214 = vmatpush.bf16.msra.mxu1 %v429_v10 }
  0x34   :  { %299 = vmatpush.bf16.msra.mxu2 %v437_v26 }
  0x98   :  { %v131_v15 = vpop.f32.mrf.mxu0 }
  0x99   :  { %v132_v17 = vadd.f32 %v454_v16, %v131_v15 }
  0x9b   :  { %v136_v20 = vmax.f32 %v132_v17, 0.0 }
  0xa0   :  { %v133_v18 = vpop.f32.mrf.mxu0 }
  0xa1   :  { %v134_v19 = vadd.f32 %v454_v16, %v133_v18 }
  0xa3   :  { %v137_v21 = vmax.f32 %v134_v19, 0.0 }
  0xa5   :  { %v138_v22 = vpack.c.bf16 %v137_v21, %v136_v20 }
  0xa7   :  { %215 = vmatmul.bf16.vlgmr.msra.gmra.mxu1 %v138_v22 }
 0x124   :  { %v216_v27 = vpop.f32.mrf.mxu1 }
 0x125   :  { %v217_v29 = vadd.f32 %v455_v28, %v216_v27 }
 0x127   :  { %v221_v32 = vmax.f32 %v217_v29, 0.0 }
 0x12c   :  { %v218_v30 = vpop.f32.mrf.mxu1 }
 0x12d   :  { %v219_v31 = vadd.f32 %v455_v28, %v218_v30 }
 0x12f   :  { %v222_v33 = vmax.f32 %v219_v31, 0.0 }
 0x131   :  { %v223_v34 = vpack.c.bf16 %v222_v33, %v221_v32 }
 0x133   :  { %300 = vmatmul.bf16.vlgmr.msra.gmra.mxu2 %v223_v34 }
 0x1b6   :  { %v301_v36 = vpop.f32.mrf.mxu2 }
 0x1b7   :  { %v302_v37 = vadd.f32 %v456_v35, %v301_v36 }
 0x1b9   :  { %306 = vmax.xlane.f32.xlu0 %v302_v37 }
 0x1be   :  { %v303_v38 = vpop.f32.mrf.mxu2 }
 0x1bf   :  { %v304_v39 = vadd.f32 %v456_v35, %v303_v38 }
 0x1c1   :  { %308 = vmax.xlane.f32.xlu0 %v304_v39 }
 0x22c   :  { %v307_v40 = vpop.xlane.xlu0 %306 }
 0x22d   :  { %v310_v41 = vsub.f32 %v302_v37, %v307_v40 }
 0x22f   :  { %v312_v42 = vmul.f32 1.442695, %v310_v41 }
 0x231   :  { %457 = vpow2.f32 %v312_v42 }
 0x234   :  { %v309_v43 = vpop.xlane.xlu0 %308 }
 0x235   :  { %v311_v44 = vsub.f32 %v304_v39, %v309_v43 }
 0x237   :  { %v458_v45 = vpop.eup %457  ;;  %v314_v46 = vmul.f32 1.442695, %v311_v44 }
 0x238   :  { %316 = vadd.xlane.f32.xlu1 %v458_v45 }
 0x239   :  { %459 = vpow2.f32 %v314_v46 }
 0x23f   :  { %v460_v47 = vpop.eup %459 }
 0x240   :  { %318 = vadd.xlane.f32.xlu1 %v460_v47 }
 0x2ab   :  { %v317_v48 = vpop.xlane.xlu1 %316 }
 0x2ac   :  { %461 = vlog2.f32 %v317_v48 }
 0x2b2   :  { %v462_v49 = vpop.eup %461 }
 0x2b3   :  { %v321_v50 = vmul.f32 0.6931472, %v462_v49  ;;  %v319_v51 = vpop.xlane.xlu1 %318 }
 0x2b4   :  { %463 = vlog2.f32 %v319_v51 }
 0x2b5   :  { %v324_v52 = vsub.f32 %v310_v41, %v321_v50 }
 0x2b7   :  { %326 = vst [vmem:[#allocation10] sm:$0xff] %v324_v52 }
 0x2ba   :  { %v464_v53 = vpop.eup %463 }
 0x2bb   :  { %v323_v54 = vmul.f32 0.6931472, %v464_v53 }
 0x2bd   :  { %v325_v55 = vsub.f32 %v311_v44, %v323_v54 }
 0x2bf   :  { %327 = vst [vmem:[#allocation10 + $0x8] sm:$0xff] %v325_v55 }
 0x2c0   :  { %340 = dma.vmem_to_hbm [thread:$0]  %s333_s6, 256, %s335_s26, [#allocation4], %s600_s27, %s600_s27, %s601_s28  }
 0x2c1   :  { %591 = dma.done.wait [#allocation4], 256  }
 0x2c2   :  { %592 = vsyncadd [#allocation4], 4294967040 }
 0x2c3   :  { %345 = vsyncpa [#allocation3], 1 }
 0x2c4   :  { %346 = vsyncpa [#allocation6], 1 }
 0x2c5   :  { %347 = vsyncpa [#allocation9], 1 }
 0x2c6   :  { %348 = vsyncpa [#allocation4], 1 }

</bundles_post_ra>
